<compile_context>
chip_gen: v6e
topology: v6e:2x2x1
jax: 0.10.0
libtpu: 0.0.40
codegen_flags: <defaults>
</compile_context>

<pallas_src>
import jax
import jax.numpy as jnp
from jax.experimental import pallas as pl
from jax.experimental.pallas import tpu as pltpu

LOOKBACK = 10
HIDDEN_SIZE = 128
MID_SIZE = 64
OUTPUT_SIZE = 1
SUBLANE = 8
TM_MAX = 4096   # batch tile: big enough to amortize ~0.35us/step pipeline overhead


def _cdiv(a, b):
    return (a + b - 1) // b


def _round_up(n, m):
    return ((n + m - 1) // m) * m


def _mlp_kernel(x_ref, w1_ref, b1_ref, w2_ref, b2_ref, w3_ref, b3_ref, o_ref):
    """One batch tile: three fused matmul + bias (+ReLU) layers.

    x arrives in f32 and is cast to the weights' dtype in-kernel (VPU has slack);
    matmuls run on the MXU with f32 accumulation; bias adds / ReLUs stay f32 on the
    VPU.  Output is the compact (tm, 1) column — no padded lanes written to HBM.
    """
    x = x_ref[...].astype(w1_ref.dtype)
    h1 = jnp.dot(x, w1_ref[...], preferred_element_type=jnp.float32) + b1_ref[...]
    h1 = jnp.maximum(h1, 0.0).astype(w2_ref.dtype)
    h2 = jnp.dot(h1, w2_ref[...], preferred_element_type=jnp.float32) + b2_ref[...]
    h2 = jnp.maximum(h2, 0.0).astype(w3_ref.dtype)
    out = jnp.dot(h2, w3_ref[...], preferred_element_type=jnp.float32) + b3_ref[...]
    o_ref[...] = out.astype(o_ref.dtype)


def prepare_params(w1, b1, w2, b2, w3, b3, matmul_dtype=jnp.bfloat16):
    """Hoist per-call casts: weights -> matmul_dtype, biases -> f32. Call once."""
    return (w1.astype(matmul_dtype), b1.astype(jnp.float32),
            w2.astype(matmul_dtype), b2.astype(jnp.float32),
            w3.astype(matmul_dtype), b3.astype(jnp.float32))


def _pick_tiling(B, tm_max):
    """Balanced batch tiling: 8-aligned tiles, >=2 grid steps when B is big enough
    (so v7x's two TensorCores both work), no near-doubled padding at unlucky B."""
    b_min = _round_up(B, SUBLANE)
    num_steps = _cdiv(b_min, tm_max)
    if b_min >= 256:                      # each TC gets a meaningful tile
        num_steps = max(num_steps, 2)
    tm = _round_up(_cdiv(b_min, num_steps), SUBLANE)
    b_pad = tm * num_steps
    return tm, b_pad, num_steps


def nlayernet_forward(x, w1, b1, w2, b2, w3, b3, *,
                      matmul_dtype=jnp.bfloat16, tm_max=TM_MAX):
    """x: (B, LOOKBACK) f32. Weights stored as (in, out); biases as (1, out).

    Returns (B, OUTPUT_SIZE) f32.
    """
    B = x.shape[0]
    tm, b_pad, num_steps = _pick_tiling(B, tm_max)
    grid = (num_steps,)

    # x stays f32 on the wire (cast happens in-kernel); only pad if needed.
    xp = x if b_pad == B else jnp.pad(x, ((0, b_pad - B), (0, 0)))

    # No-ops if params were already run through prepare_params().
    w1m, b1f, w2m, b2f, w3m, b3f = prepare_params(
        w1, b1, w2, b2, w3, b3, matmul_dtype)

    weight_bytes = sum(a.size * a.dtype.itemsize
                       for a in (w1m, w2m, w3m, b1f, b2f, b3f))
    cost = pl.CostEstimate(
        flops=2 * b_pad * (LOOKBACK * HIDDEN_SIZE
                           + HIDDEN_SIZE * MID_SIZE
                           + MID_SIZE * OUTPUT_SIZE),
        transcendentals=0,
        bytes_accessed=(xp.size * xp.dtype.itemsize        # x in (f32)
                        + b_pad * OUTPUT_SIZE * 4           # compact output
                        + weight_bytes),
    )

    out_padded = pl.pallas_call(
        _mlp_kernel,
        out_shape=jax.ShapeDtypeStruct((b_pad, OUTPUT_SIZE), jnp.float32),
        grid_spec=pltpu.PrefetchScalarGridSpec(
            num_scalar_prefetch=0,
            grid=grid,
            in_specs=[
                # x: tiled along batch, auto double-buffered by BlockSpec.
                pl.BlockSpec((tm, LOOKBACK), lambda i: (i, 0)),
                # Weights/biases: constant index_map -> fetched once, VMEM-resident.
                pl.BlockSpec((LOOKBACK, HIDDEN_SIZE), lambda i: (0, 0)),
                pl.BlockSpec((1, HIDDEN_SIZE), lambda i: (0, 0)),
                pl.BlockSpec((HIDDEN_SIZE, MID_SIZE), lambda i: (0, 0)),
                pl.BlockSpec((1, MID_SIZE), lambda i: (0, 0)),
                pl.BlockSpec((MID_SIZE, OUTPUT_SIZE), lambda i: (0, 0)),
                pl.BlockSpec((1, OUTPUT_SIZE), lambda i: (0, 0)),
            ],
            # Compact output column: 4 B/row of HBM writeback.
            out_specs=pl.BlockSpec((tm, OUTPUT_SIZE), lambda i: (i, 0)),
        ),
        compiler_params=pltpu.CompilerParams(
            # Independent batch tiles: shard across both TCs on v7x
            # (harmless no-op on single-TC v5e/v6e).
            dimension_semantics=("parallel",),
            # TM=4096 buffers + f32 intermediates exceed v5e's 16 MiB scoped
            # default; 32 MiB is within physical VMEM on v5e/v6e/v7x.
            vmem_limit_bytes=32 * 1024 * 1024,
        ),
        cost_estimate=cost,
    )(xp, w1m, b1f, w2m, b2f, w3m, b3f)

    return out_padded if b_pad == B else out_padded[:B]


def init_params(key):
    """Deterministic init mimicking nn.Linear default: U(-1/sqrt(fan_in), 1/sqrt(fan_in))."""
    ks = jax.random.split(key, 6)

    def lin(kw, kb, fan_in, fan_out):
        bound = 1.0 / jnp.sqrt(jnp.float32(fan_in))
        w = jax.random.uniform(kw, (fan_in, fan_out), jnp.float32, -bound, bound)
        b = jax.random.uniform(kb, (1, fan_out), jnp.float32, -bound, bound)
        return w, b

    w1, b1 = lin(ks[0], ks[1], LOOKBACK, HIDDEN_SIZE)
    w2, b2 = lin(ks[2], ks[3], HIDDEN_SIZE, MID_SIZE)
    w3, b3 = lin(ks[4], ks[5], MID_SIZE, OUTPUT_SIZE)
    return w1, b1, w2, b2, w3, b3


if __name__ == "__main__":
    key = jax.random.PRNGKey(0)
    k_x, k_p = jax.random.split(key)
    params = init_params(k_p)
    w1, b1, w2, b2, w3, b3 = params

    def ref_fwd(xv):
        h1 = jnp.maximum(xv @ w1 + b1, 0.0)
        h2 = jnp.maximum(h1 @ w2 + b2, 0.0)
        return h2 @ w3 + b3

    # 1) small batch, exact f32 matmul path (tight tolerance)
    B = 8
    x = jax.random.normal(k_x, (B, LOOKBACK), jnp.float32)
    out_f32 = jax.block_until_ready(
        nlayernet_forward(x, *params, matmul_dtype=jnp.float32))
    assert out_f32.shape == (B, OUTPUT_SIZE)
    assert jnp.allclose(out_f32, ref_fwd(x), atol=1e-5, rtol=1e-5)

    # 2) default bf16-matmul path with pre-hoisted (prepared) weights —
    #    looser tolerance vs f32 reference.
    prepped = prepare_params(*params)
    out_bf16 = jax.block_until_ready(nlayernet_forward(x, *prepped))
    assert out_bf16.shape == (B, OUTPUT_SIZE)
    assert jnp.allclose(out_bf16, ref_fwd(x), atol=5e-2, rtol=5e-2)

    # 3) batch not a multiple of the tile + multi-step grid: exercises batch
    #    padding, balanced tile selection, VMEM-resident weights across steps,
    #    and the compact-column output path.
    B2 = 40
    x2 = jax.random.normal(jax.random.PRNGKey(1), (B2, LOOKBACK), jnp.float32)
    out2 = jax.block_until_ready(
        nlayernet_forward(x2, *params, matmul_dtype=jnp.float32, tm_max=16))
    assert out2.shape == (B2, OUTPUT_SIZE)
    assert jnp.allclose(out2, ref_fwd(x2), atol=1e-5, rtol=1e-5)

    print("KERNEL_OK")
</pallas_src>

<mosaic_0001>
module attributes {stable_mosaic.version = 11 : i64} {
  func.func @_mlp_kernel(%arg0: i32, %arg1: memref<8x10xf32, #tpu.memory_space<vmem>>, %arg2: memref<10x128xf32, #tpu.memory_space<vmem>>, %arg3: memref<1x128xf32, #tpu.memory_space<vmem>>, %arg4: memref<128x64xf32, #tpu.memory_space<vmem>>, %arg5: memref<1x64xf32, #tpu.memory_space<vmem>>, %arg6: memref<64x1xf32, #tpu.memory_space<vmem>>, %arg7: memref<1x1xf32, #tpu.memory_space<vmem>>, %arg8: memref<8x1xf32, #tpu.memory_space<vmem>>) attributes {dimension_semantics = [#tpu.dimension_semantics<parallel>], iteration_bounds = array<i64: 1>, scalar_prefetch = 0 : i64, scratch_operands = 0 : i64, tpu.core_type = #tpu.core_type<tc>, window_params = [{transform_indices = @transform_0, window_bounds = array<i64: 8, 10>}, {pipeline_mode = #tpu.pipeline_mode<synchronous>, transform_indices = @transform_1, window_bounds = array<i64: 10, 128>}, {pipeline_mode = #tpu.pipeline_mode<synchronous>, transform_indices = @transform_2, window_bounds = array<i64: 1, 128>}, {pipeline_mode = #tpu.pipeline_mode<synchronous>, transform_indices = @transform_3, window_bounds = array<i64: 128, 64>}, {pipeline_mode = #tpu.pipeline_mode<synchronous>, transform_indices = @transform_4, window_bounds = array<i64: 1, 64>}, {pipeline_mode = #tpu.pipeline_mode<synchronous>, transform_indices = @transform_5, window_bounds = array<i64: 64, 1>}, {pipeline_mode = #tpu.pipeline_mode<synchronous>, transform_indices = @transform_6, window_bounds = array<i64: 1, 1>}, {transform_indices = @transform_7, window_bounds = array<i64: 8, 1>}]} {
    %c0 = arith.constant 0 : index
    %c0_0 = arith.constant 0 : index
    %0 = vector.load %arg1[%c0, %c0_0] : memref<8x10xf32, #tpu.memory_space<vmem>>, vector<8x10xf32>
    %c0_1 = arith.constant 0 : index
    %c0_2 = arith.constant 0 : index
    %1 = vector.load %arg2[%c0_1, %c0_2] : memref<10x128xf32, #tpu.memory_space<vmem>>, vector<10x128xf32>
    %cst = arith.constant dense<0.000000e+00> : vector<8x128xf32>
    %2 = tpu.matmul %0, %1, %cst {dimension_numbers = #tpu.dot_dimension_numbers<[1], [0], [0], [1], [0, 0, 1, 1], [], []>} : vector<8x10xf32>, vector<10x128xf32>, vector<8x128xf32> -> vector<8x128xf32>
    %c0_3 = arith.constant 0 : index
    %c0_4 = arith.constant 0 : index
    %3 = vector.load %arg3[%c0_3, %c0_4] : memref<1x128xf32, #tpu.memory_space<vmem>>, vector<1x128xf32>
    %4 = vector.broadcast %3 : vector<1x128xf32> to vector<8x128xf32>
    %5 = arith.addf %2, %4 : vector<8x128xf32>
    %cst_5 = arith.constant 0.000000e+00 : f32
    %6 = vector.broadcast %cst_5 : f32 to vector<8x128xf32>
    %7 = arith.maximumf %5, %6 : vector<8x128xf32>
    %c0_6 = arith.constant 0 : index
    %c0_7 = arith.constant 0 : index
    %8 = vector.load %arg4[%c0_6, %c0_7] : memref<128x64xf32, #tpu.memory_space<vmem>>, vector<128x64xf32>
    %cst_8 = arith.constant dense<0.000000e+00> : vector<8x64xf32>
    %9 = tpu.matmul %7, %8, %cst_8 {dimension_numbers = #tpu.dot_dimension_numbers<[1], [0], [0], [1], [0, 0, 1, 1], [], []>} : vector<8x128xf32>, vector<128x64xf32>, vector<8x64xf32> -> vector<8x64xf32>
    %c0_9 = arith.constant 0 : index
    %c0_10 = arith.constant 0 : index
    %10 = vector.load %arg5[%c0_9, %c0_10] : memref<1x64xf32, #tpu.memory_space<vmem>>, vector<1x64xf32>
    %11 = vector.broadcast %10 : vector<1x64xf32> to vector<8x64xf32>
    %12 = arith.addf %9, %11 : vector<8x64xf32>
    %cst_11 = arith.constant 0.000000e+00 : f32
    %13 = vector.broadcast %cst_11 : f32 to vector<8x64xf32>
    %14 = arith.maximumf %12, %13 : vector<8x64xf32>
    %c0_12 = arith.constant 0 : index
    %c0_13 = arith.constant 0 : index
    %15 = vector.load %arg6[%c0_12, %c0_13] : memref<64x1xf32, #tpu.memory_space<vmem>>, vector<64x1xf32>
    %cst_14 = arith.constant dense<0.000000e+00> : vector<8x1xf32>
    %16 = tpu.matmul %14, %15, %cst_14 {dimension_numbers = #tpu.dot_dimension_numbers<[1], [0], [0], [1], [0, 0, 1, 1], [], []>} : vector<8x64xf32>, vector<64x1xf32>, vector<8x1xf32> -> vector<8x1xf32>
    %c0_15 = arith.constant 0 : index
    %c0_16 = arith.constant 0 : index
    %17 = vector.load %arg7[%c0_15, %c0_16] : memref<1x1xf32, #tpu.memory_space<vmem>>, vector<1x1xf32>
    %18 = vector.broadcast %17 : vector<1x1xf32> to vector<8x1xf32>
    %19 = arith.addf %16, %18 : vector<8x1xf32>
    %c0_17 = arith.constant 0 : index
    %c0_18 = arith.constant 0 : index
    %20 = vector.load %arg8[%c0_17, %c0_18] : memref<8x1xf32, #tpu.memory_space<vmem>>, vector<8x1xf32>
    tpu.vector_store %arg8[%c0_17, %c0_18], %19 {strides = array<i32>} : memref<8x1xf32, #tpu.memory_space<vmem>>, vector<8x1xf32>,
    return
  }
  func.func @transform_0(%arg0: i32) -> (i32, i32) {
    %c0_i32 = arith.constant 0 : i32
    %c0_i32_0 = arith.constant 0 : i32
    return %arg0, %c0_i32 : i32, i32
  }
  func.func @transform_1(%arg0: i32) -> (i32, i32) {
    %c0_i32 = arith.constant 0 : i32
    %c0_i32_0 = arith.constant 0 : i32
    %c0_i32_1 = arith.constant 0 : i32
    return %c0_i32, %c0_i32_0 : i32, i32
  }
  func.func @transform_2(%arg0: i32) -> (i32, i32) {
    %c0_i32 = arith.constant 0 : i32
    %c0_i32_0 = arith.constant 0 : i32
    %c0_i32_1 = arith.constant 0 : i32
    return %c0_i32, %c0_i32_0 : i32, i32
  }
  func.func @transform_3(%arg0: i32) -> (i32, i32) {
    %c0_i32 = arith.constant 0 : i32
    %c0_i32_0 = arith.constant 0 : i32
    %c0_i32_1 = arith.constant 0 : i32
    return %c0_i32, %c0_i32_0 : i32, i32
  }
  func.func @transform_4(%arg0: i32) -> (i32, i32) {
    %c0_i32 = arith.constant 0 : i32
    %c0_i32_0 = arith.constant 0 : i32
    %c0_i32_1 = arith.constant 0 : i32
    return %c0_i32, %c0_i32_0 : i32, i32
  }
  func.func @transform_5(%arg0: i32) -> (i32, i32) {
    %c0_i32 = arith.constant 0 : i32
    %c0_i32_0 = arith.constant 0 : i32
    %c0_i32_1 = arith.constant 0 : i32
    return %c0_i32, %c0_i32_0 : i32, i32
  }
  func.func @transform_6(%arg0: i32) -> (i32, i32) {
    %c0_i32 = arith.constant 0 : i32
    %c0_i32_0 = arith.constant 0 : i32
    %c0_i32_1 = arith.constant 0 : i32
    return %c0_i32, %c0_i32_0 : i32, i32
  }
  func.func @transform_7(%arg0: i32) -> (i32, i32) {
    %c0_i32 = arith.constant 0 : i32
    %c0_i32_0 = arith.constant 0 : i32
    return %arg0, %c0_i32 : i32, i32
  }
}

</mosaic_0001>

<bundles_post_ra>
// kernel: tpu_custom_call.1
= control target key start
LH: loop header
LB: loop body
LE: loop exit
PB: predicated region body
PF: predicated region fallthrough
CT: control target
= control target key end

     0   :  { %vm42_vm0 = vcmask 1041408   ;;  %v404_v0 = vmov 0.0   ;;  %vm405_vm1 = vmmov 0   ;;  %vm38_vm2 = vcmask 80896   ;;  %s571_s1 = inlined_call_operand.vmem [shape: f32[10,128], index: 1, kind: input, shape index: {}]   ;;  %s572_s0 = inlined_call_operand.vmem [shape: f32[8,10], index: 0, kind: input, shape index: {}]   ;;  %s573_s3 = inlined_call_operand.vmem [shape: f32[128,64], index: 3, kind: input, shape index: {}]   ;;  %s574_s5 = inlined_call_operand.vmem [shape: f32[64,1], index: 5, kind: input, shape index: {}]   ;;  %s575_s2 = inlined_call_operand.vmem [shape: f32[1,128], index: 2, kind: input, shape index: {}]   ;;  %s576_s6 = inlined_call_operand.<no memory space> [shape: f32[1,1], index: 6, kind: input, shape index: {}]   ;;  %s577_s4 = inlined_call_operand.vmem [shape: f32[1,64], index: 4, kind: input, shape index: {}]   ;;  %s578_s7 = inlined_call_operand.vmem [shape: f32[8,1], index: 7, kind: output, shape index: {}]  }
   0x1   :  { %341 = vmatprep.subr.mxu0 %v404_v0  ;;  %v30_v1 = vld [vmem:[%s571_s1 + $0x8] sm:$0x3]  ;;  %v29_v2 = vld [vmem:[%s571_s1] sm:$0xff]  ;;  %345 = vmatprep.mubr.msk.f32.mxu0 %vm405_vm1, %v404_v0  ;;  %v132_v4 = vld [vmem:[%s573_s3 + $0x78] sm:$0xff]  ;;  %v12_v33 = vstv %s576_s6  ;;  %vm226_vm3 = vcmask 523264   ;;  %vm300_vm4 = vcmask 7168  }
   0x2   :  { %342 = vmatpush3.msk.msra.mxu0 %vm42_vm0, %v30_v1  ;;  %v28_v3 = vld [vmem:[%s572_s0] sm:$0xff]  ;;  %348 = vmatprep.subr.mxu1 %v404_v0  ;;  %v131_v5 = vld [vmem:[%s573_s3 + $0x70] sm:$0xff]  ;;  %v130_v6 = vld [vmem:[%s573_s3 + $0x68] sm:$0xff]  ;;  %13 = vst [vmem:[#allocation2] sm:$0x1] %v12_v33 }
   0x3   :  { %343 = vmatprep.subr.mxu0 %v404_v0  ;;  %349 = vmatpush3.msra.mxu1 %v132_v4  ;;  %v129_v7 = vld [vmem:[%s573_s3 + $0x60] sm:$0xff]  ;;  %v128_v8 = vld [vmem:[%s573_s3 + $0x58] sm:$0xff]  ;;  %v127_v9 = vld [vmem:[%s573_s3 + $0x50] sm:$0xff] }
   0x4   :  { %344 = vmatpush3.msra.mxu0 %v29_v2  ;;  %350 = vmatprep.subr.mxu1 %v404_v0  ;;  %v126_v10 = vld [vmem:[%s573_s3 + $0x48] sm:$0xff]  ;;  %v125_v11 = vld [vmem:[%s573_s3 + $0x40] sm:$0xff]  ;;  %v124_v12 = vld [vmem:[%s573_s3 + $0x38] sm:$0xff] }
   0x5   :  { %346 = vmatmul.mubr.msk.f32.vlgmr.msra.gmra.mxu0 %vm38_vm2, %v28_v3  ;;  %351 = vmatpush3.msra.mxu1 %v131_v5  ;;  %v123_v13 = vld [vmem:[%s573_s3 + $0x30] sm:$0xff]  ;;  %v122_v14 = vld [vmem:[%s573_s3 + $0x28] sm:$0xff]  ;;  %v121_v15 = vld [vmem:[%s573_s3 + $0x20] sm:$0xff] }
   0x6   :  { %352 = vmatprep.subr.mxu1 %v404_v0  ;;  %380 = vmatprep.mubr.msk.f32.mxu1 %vm405_vm1, %v404_v0  ;;  %v120_v16 = vld [vmem:[%s573_s3 + $0x18] sm:$0xff]  ;;  %v119_v17 = vld [vmem:[%s573_s3 + $0x10] sm:$0xff]  ;;  %v118_v18 = vld [vmem:[%s573_s3 + $0x8] sm:$0xff] }
   0x7   :  { %353 = vmatpush3.msra.mxu1 %v130_v6  ;;  %383 = vmatprep.subr.mxu0 %v404_v0  ;;  %v117_v19 = vld [vmem:[%s573_s3] sm:$0xff]  ;;  %v218_v20 = vld [vmem:[%s574_s5 + $0x38] sm:$0xff]  ;;  %v217_v21 = vld [vmem:[%s574_s5 + $0x30] sm:$0xff] }
   0x8   :  { %354 = vmatprep.subr.mxu1 %v404_v0  ;;  %399 = vmatprep.mubr.msk.f32.mxu0 %vm405_vm1, %v404_v0  ;;  %v216_v22 = vld [vmem:[%s574_s5 + $0x28] sm:$0xff]  ;;  %v215_v23 = vld [vmem:[%s574_s5 + $0x20] sm:$0xff]  ;;  %v214_v24 = vld [vmem:[%s574_s5 + $0x18] sm:$0xff] }
   0x9   :  { %355 = vmatpush3.msra.mxu1 %v129_v7  ;;  %384 = vmatpush3.msra.mxu0 %v218_v20  ;;  %v306_v25 = vld [vmem:[%s575_s2] ss:$0 sm:$0xff]  ;;  %v213_v30 = vld [vmem:[%s574_s5 + $0x10] sm:$0xff]  ;;  %v212_v31 = vld [vmem:[%s574_s5 + $0x8] sm:$0xff] }
   0xa   :  { %356 = vmatprep.subr.mxu1 %v404_v0  ;;  %385 = vmatprep.subr.mxu0 %v404_v0  ;;  %v211_v32 = vld [vmem:[%s574_s5] sm:$0xff] }
   0xb   :  { %357 = vmatpush3.msra.mxu1 %v128_v8  ;;  %386 = vmatpush3.msra.mxu0 %v217_v21  ;;  %v309_v34 = vld [vmem:[%s577_s4] ss:$0 sm:$0xff] }
   0xc   :  { %358 = vmatprep.subr.mxu1 %v404_v0  ;;  %387 = vmatprep.subr.mxu0 %v404_v0  ;;  %v310_v39 = vld [vmem:[#allocation2] ss:$0 sm:$0xff] }
   0xd   :  { %359 = vmatpush3.msra.mxu1 %v127_v9  ;;  %388 = vmatpush3.msra.mxu0 %v216_v22 }
   0xe   :  { %360 = vmatprep.subr.mxu1 %v404_v0  ;;  %389 = vmatprep.subr.mxu0 %v404_v0 }
   0xf   :  { %361 = vmatpush3.msra.mxu1 %v126_v10  ;;  %390 = vmatpush3.msra.mxu0 %v215_v23 }
  0x10   :  { %362 = vmatprep.subr.mxu1 %v404_v0  ;;  %391 = vmatprep.subr.mxu0 %v404_v0 }
  0x11   :  { %363 = vmatpush3.msra.mxu1 %v125_v11  ;;  %392 = vmatpush3.msra.mxu0 %v214_v24 }
  0x12   :  { %364 = vmatprep.subr.mxu1 %v404_v0  ;;  %393 = vmatprep.subr.mxu0 %v404_v0 }
  0x13   :  { %365 = vmatpush3.msra.mxu1 %v124_v12  ;;  %394 = vmatpush3.msra.mxu0 %v213_v30 }
  0x14   :  { %366 = vmatprep.subr.mxu1 %v404_v0  ;;  %395 = vmatprep.subr.mxu0 %v404_v0 }
  0x15   :  { %367 = vmatpush3.msra.mxu1 %v123_v13  ;;  %396 = vmatpush3.msra.mxu0 %v212_v31 }
  0x16   :  { %368 = vmatprep.subr.mxu1 %v404_v0  ;;  %397 = vmatprep.subr.mxu0 %v404_v0 }
  0x17   :  { %369 = vmatpush3.msra.mxu1 %v122_v14  ;;  %398 = vmatpush3.msra.mxu0 %v211_v32 }
  0x18   :  { %370 = vmatprep.subr.mxu1 %v404_v0 }
  0x19   :  { %371 = vmatpush3.msra.mxu1 %v121_v15 }
  0x1a   :  { %372 = vmatprep.subr.mxu1 %v404_v0 }
  0x1b   :  { %373 = vmatpush3.msra.mxu1 %v120_v16 }
  0x1c   :  { %374 = vmatprep.subr.mxu1 %v404_v0 }
  0x1d   :  { %375 = vmatpush3.msra.mxu1 %v119_v17 }
  0x1e   :  { %376 = vmatprep.subr.mxu1 %v404_v0 }
  0x1f   :  { %377 = vmatpush3.msra.mxu1 %v118_v18 }
  0x20   :  { %378 = vmatprep.subr.mxu1 %v404_v0 }
  0x21   :  { %379 = vmatpush3.msra.mxu1 %v117_v19 }
  0xc5   :  { %v112_v26 = vpop.f32.mrf.mxu0 }
  0xc6   :  { %v113_v27 = vadd.f32 %v306_v25, %v112_v26 }
  0xc7   :  { %v347_v28 = vpop.f32.mrf.mxu0 }
  0xc8   :  { %v116_v29 = vmax.f32 %v113_v27, 0.0 }
  0xca   :  { %381 = vmatmul.mubr.f32.vlgmr.msra.gmra.mxu1 %v116_v29 }
 0x18a   :  { %v206_v35 = vpop.f32.mrf.mxu1 }
 0x18b   :  { %v207_v36 = vadd.f32 %v309_v34, %v206_v35 }
 0x18c   :  { %v382_v37 = vpop.f32.mrf.mxu1 }
 0x18d   :  { %v210_v38 = vmax.f32 %v207_v36, 0.0 }
 0x18f   :  { %400 = vmatmul.mubr.msk.f32.vlgmr.msra.gmra.mxu0 %vm226_vm3, %v210_v38 }
 0x24f   :  { %v296_v40 = vpop.f32.mrf.mxu0 }
 0x250   :  { %v297_v41 = vadd.f32 %v310_v39, %v296_v40 }
 0x251   :  { %v401_v42 = vpop.f32.mrf.mxu0 }
 0x252   :  { %301 = vst.msk [vmem:[%s578_s7] sm:$0xff] %vm300_vm4, %v297_v41 }

</bundles_post_ra>
